<compile_context>
chip_gen: v5e
topology: v5e:2x2
jax: 0.10.0
libtpu: 0.0.40
codegen_flags: <defaults>
</compile_context>

<pallas_src>
import functools

import jax
import jax.numpy as jnp
import numpy as np
from jax.experimental import pallas as pl
from jax.experimental.pallas import tpu as pltpu

OUT_ATTRS = 8  # 6 result rows [bx,by,bw,bh,conf,cls] + 2 zero-pad rows


def _bbox_decode_kernel(grid_ref, pred_ref, out_ref, *,
                        n_cls, scale_w, scale_h, pw, ph):
    """Decode all anchors of one sample.

    grid_ref : VMEM (2, HW) f32      row0 = grid_x, row1 = grid_y
    pred_ref : VMEM (1, n_A, 5+n_cls, HW), native input dtype
    out_ref  : VMEM (1, n_A, OUT_ATTRS, HW) f32
    pw, ph   : Python tuples of len n_A (scaled anchors), baked constants.
    """
    p = pred_ref[0].astype(jnp.float32)          # (n_A, attrs, HW)
    n_A = p.shape[0]
    hw = p.shape[-1]

    gx = grid_ref[0:1, :][None, :, :]            # (1, 1, HW)
    gy = grid_ref[1:2, :][None, :, :]

    sig = jax.nn.sigmoid
    bx = (sig(p[:, 0:1, :]) + gx) * scale_w      # (n_A, 1, HW)
    by = (sig(p[:, 1:2, :]) + gy) * scale_h

    e_w = jnp.exp(p[:, 2:3, :])
    e_h = jnp.exp(p[:, 3:4, :])
    # anchors are static -> per-anchor scalar (splat) multiplies, folded at
    # trace time with the scale factor; concat along the (untiled) anchor dim.
    bw = jnp.concatenate(
        [e_w[a:a + 1] * (pw[a] * scale_w) for a in range(n_A)], axis=0)
    bh = jnp.concatenate(
        [e_h[a:a + 1] * (ph[a] * scale_h) for a in range(n_A)], axis=0)

    conf = sig(p[:, 4:5, :])

    # Single-pass running argmax over classes (first occurrence wins on ties,
    # matching np.argmax).  sigmoid is monotone, so argmax of logits is enough.
    best = p[:, 5:6, :]
    cls_id = jnp.zeros_like(best)
    for k in range(1, n_cls):
        row = p[:, 5 + k:6 + k, :]
        better = row > best
        best = jnp.where(better, row, best)
        cls_id = jnp.where(better, jnp.float32(k), cls_id)

    pad = jnp.zeros((n_A, OUT_ATTRS - 6, hw), jnp.float32)
    # One dense full-block store (8 sublanes fully used, no masked row stores).
    out_ref[0] = jnp.concatenate([bx, by, bw, bh, conf, cls_id, pad], axis=1)


def bbox_proposer_decode(x, anchors, n_cls, img_h, img_w):
    """Dense box-decode part of BBoxProposer.forward.

    x: (n_S, n_A*(5+n_cls), n_H, n_W), NCHW as in PyTorch (any float dtype;
       DMA'd in native dtype, math in f32).
    Returns out: (n_S, n_A, OUT_ATTRS, HW) f32, kernel-native layout:
      out[s, a, 0:6, i*n_H + j] = [bx, by, bw, bh, conf, cls] at cell (i, j)
      (same quirky torch .view(n_S, n_A, attrs, n_W, n_H) flattening),
      rows 6:8 are zero padding.
    """
    n_S, C, n_H, n_W = x.shape
    n_A = len(anchors)
    attrs = 5 + n_cls
    assert C == n_A * attrs
    assert n_H == n_W, "reference broadcast semantics require a square fmap"
    scale_h = img_h / n_H
    scale_w = img_w / n_W
    HW = n_W * n_H

    # Free reshape (same memory order as torch's .view) -- no dtype upcast
    # before the DMA.
    pred = x.reshape(n_S, n_A, attrs, HW)

    # Precomputed grid constant: avoids int div/mod inside the kernel.
    flat = np.arange(HW)
    grid_const = jnp.asarray(
        np.stack([flat % n_H, flat // n_H], axis=0).astype(np.float32))  # (2, HW)

    pw = tuple(float(aw) / scale_w for aw, _ah in anchors)
    ph = tuple(float(ah) / scale_h for _aw, ah in anchors)

    kernel = functools.partial(
        _bbox_decode_kernel, n_cls=n_cls,
        scale_w=float(scale_w), scale_h=float(scale_h), pw=pw, ph=ph)

    # VMEM budget (per grid step, double-buffered): in + out + grid blocks are
    # only a few KB at these shapes -- far below even v7x's 64 MiB VMEM.
    # TODO(synk): for large feature maps (HW >> 512) tile HW in 128-lane chunks.
    out = pl.pallas_call(
        kernel,
        out_shape=jax.ShapeDtypeStruct((n_S, n_A, OUT_ATTRS, HW), jnp.float32),
        grid=(n_S,),
        in_specs=[
            pl.BlockSpec((2, HW), lambda s: (0, 0)),                   # grid const
            pl.BlockSpec((1, n_A, attrs, HW), lambda s: (s, 0, 0, 0)),  # predictions
        ],
        out_specs=pl.BlockSpec((1, n_A, OUT_ATTRS, HW), lambda s: (s, 0, 0, 0)),
        compiler_params=pltpu.CompilerParams(
            dimension_semantics=("parallel",)),
    )(grid_const, pred)
    return out


def pred_boxes_torch_layout(out, n_H, n_W):
    """Optional: convert kernel-native output to the torch pred_boxes layout
    (n_S, n_A, n_W, n_H, 6).  Off the hot path (extra transpose) -- the
    threshold/NMS tail below consumes the kernel layout directly instead."""
    n_S, n_A, _, HW = out.shape
    return out[:, :, :6, :].reshape(n_S, n_A, 6, n_W, n_H).transpose(0, 1, 3, 4, 2)


def _reference_pred_boxes(x, anchors, n_cls, img_h, img_w):
    """Pure-numpy mirror of the torch code (dense part), torch layout."""
    x = np.asarray(x, np.float32)
    n_S, C, n_H, n_W = x.shape
    n_A = len(anchors)
    attrs = 5 + n_cls
    scale_h = img_h / n_H
    scale_w = img_w / n_W
    pw = np.array([aw / scale_w for aw, _ in anchors], np.float32).reshape(1, n_A, 1, 1)
    ph = np.array([ah / scale_h for _, ah in anchors], np.float32).reshape(1, n_A, 1, 1)
    grid_x = np.tile(np.arange(n_W), (n_H, 1)).reshape(1, 1, n_H, n_W).astype(np.float32)
    grid_y = np.tile(np.arange(n_H), (n_W, 1)).T.reshape(1, 1, n_H, n_W).astype(np.float32)
    pred = x.reshape(n_S, n_A, attrs, n_W, n_H).transpose(0, 1, 3, 4, 2)
    sig = lambda z: 1.0 / (1.0 + np.exp(-z))
    boxes = np.empty(pred[..., :6].shape, np.float32)
    boxes[..., 0] = (sig(pred[..., 0]) + grid_x) * scale_w
    boxes[..., 1] = (sig(pred[..., 1]) + grid_y) * scale_h
    boxes[..., 2] = pw * np.exp(pred[..., 2]) * scale_w
    boxes[..., 3] = ph * np.exp(pred[..., 3]) * scale_h
    boxes[..., 4] = sig(pred[..., 4])
    boxes[..., 5] = np.argmax(sig(pred[..., 5:]), axis=4)
    return boxes


if __name__ == "__main__":
    # Deterministic synthetic config (the module has no learned weights; its
    # "parameters" are anchors / image size / thresholds).
    anchors = [(10.0, 13.0), (16.0, 30.0), (33.0, 23.0)]
    n_cls = 3
    img_h = img_w = 64
    obj_thr = 0.9

    n_S, n_A, attrs, n_H, n_W = 2, len(anchors), 5 + n_cls, 8, 8
    HW = n_H * n_W
    key = jax.random.PRNGKey(0)
    x = jax.random.normal(key, (n_S, n_A * attrs, n_H, n_W), dtype=jnp.float32)

    out = bbox_proposer_decode(x, anchors, n_cls, img_h, img_w)
    out = jax.block_until_ready(out)
    out_np = np.asarray(out)

    # Correctness check against the numpy mirror, compared in the kernel-native
    # layout (pure index remap of the reference -- no device-side transpose).
    ref = _reference_pred_boxes(np.asarray(x), anchors, n_cls, img_h, img_w)
    ref_k = ref.transpose(0, 1, 4, 2, 3).reshape(n_S, n_A, 6, HW)
    np.testing.assert_allclose(out_np[:, :, :6, :], ref_k, rtol=1e-5, atol=1e-5)
    np.testing.assert_array_equal(out_np[:, :, 6:, :], 0.0)

    # Data-dependent tail of forward(): objectness filter (+ NMS) -> variable
    # size output / None.  Done host-side, consuming the kernel layout directly.
    keep = out_np[:, :, 4, :] > obj_thr                       # (n_S, n_A, HW)
    proposals = np.moveaxis(out_np[:, :, :6, :], 2, 3)[keep]  # (n_keep, 6)
    # TODO(synk): helper.NMS is not defined in the reference module; NMS over
    # the dynamically-sized proposal set is left out (module returns None when
    # no proposal survives the threshold).

    print("KERNEL_OK")
</pallas_src>

<mosaic_0001>
module attributes {stable_mosaic.version = 11 : i64} {
  func.func @_bbox_decode_kernel(%arg0: i32, %arg1: memref<2x64xf32, #tpu.memory_space<vmem>>, %arg2: memref<1x3x8x64xf32, #tpu.memory_space<vmem>>, %arg3: memref<1x3x8x64xf32, #tpu.memory_space<vmem>>) attributes {dimension_semantics = [#tpu.dimension_semantics<parallel>], iteration_bounds = array<i64: 2>, scalar_prefetch = 0 : i64, scratch_operands = 0 : i64, tpu.core_type = #tpu.core_type<tc>, window_params = [{pipeline_mode = #tpu.pipeline_mode<synchronous>, transform_indices = @transform_0, window_bounds = array<i64: 2, 64>}, {transform_indices = @transform_1, window_bounds = array<i64: 1, 3, 8, 64>}, {transform_indices = @transform_2, window_bounds = array<i64: 1, 3, 8, 64>}]} {
    %c0 = arith.constant 0 : index
    %c0_0 = arith.constant 0 : index
    %c0_1 = arith.constant 0 : index
    %c0_2 = arith.constant 0 : index
    %0 = vector.load %arg2[%c0, %c0_0, %c0_1, %c0_2] : memref<1x3x8x64xf32, #tpu.memory_space<vmem>>, vector<1x3x8x64xf32>
    %1 = vector.shape_cast %0 : vector<1x3x8x64xf32> to vector<3x8x64xf32>
    %c0_3 = arith.constant 0 : index
    %c0_4 = arith.constant 0 : index
    %2 = vector.load %arg1[%c0_3, %c0_4] : memref<2x64xf32, #tpu.memory_space<vmem>>, vector<1x64xf32>
    %3 = vector.shape_cast %2 : vector<1x64xf32> to vector<1x1x64xf32>
    %c1 = arith.constant 1 : index
    %c0_5 = arith.constant 0 : index
    %4 = vector.load %arg1[%c1, %c0_5] : memref<2x64xf32, #tpu.memory_space<vmem>>, vector<1x64xf32>
    %5 = vector.shape_cast %4 : vector<1x64xf32> to vector<1x1x64xf32>
    %6 = vector.extract_strided_slice %1 {offsets = [0, 0, 0], sizes = [3, 1, 64], strides = [1, 1, 1]} : vector<3x8x64xf32> to vector<3x1x64xf32>
    %7 = arith.negf %6 : vector<3x1x64xf32>
    %8 = math.exp %7 : vector<3x1x64xf32>
    %cst = arith.constant 1.000000e+00 : f32
    %9 = vector.broadcast %cst : f32 to vector<3x1x64xf32>
    %10 = arith.addf %9, %8 : vector<3x1x64xf32>
    %11 = arith.divf %9, %10 : vector<3x1x64xf32>
    %12 = vector.broadcast %3 : vector<1x1x64xf32> to vector<3x1x64xf32>
    %13 = arith.addf %11, %12 : vector<3x1x64xf32>
    %cst_6 = arith.constant 8.000000e+00 : f32
    %14 = vector.broadcast %cst_6 : f32 to vector<3x1x64xf32>
    %15 = arith.mulf %13, %14 : vector<3x1x64xf32>
    %16 = vector.extract_strided_slice %1 {offsets = [0, 1, 0], sizes = [3, 1, 64], strides = [1, 1, 1]} : vector<3x8x64xf32> to vector<3x1x64xf32>
    %17 = arith.negf %16 : vector<3x1x64xf32>
    %18 = math.exp %17 : vector<3x1x64xf32>
    %cst_7 = arith.constant 1.000000e+00 : f32
    %19 = vector.broadcast %cst_7 : f32 to vector<3x1x64xf32>
    %20 = arith.addf %19, %18 : vector<3x1x64xf32>
    %21 = arith.divf %19, %20 : vector<3x1x64xf32>
    %22 = vector.broadcast %5 : vector<1x1x64xf32> to vector<3x1x64xf32>
    %23 = arith.addf %21, %22 : vector<3x1x64xf32>
    %cst_8 = arith.constant 8.000000e+00 : f32
    %24 = vector.broadcast %cst_8 : f32 to vector<3x1x64xf32>
    %25 = arith.mulf %23, %24 : vector<3x1x64xf32>
    %26 = vector.extract_strided_slice %1 {offsets = [0, 2, 0], sizes = [3, 1, 64], strides = [1, 1, 1]} : vector<3x8x64xf32> to vector<3x1x64xf32>
    %27 = math.exp %26 : vector<3x1x64xf32>
    %28 = vector.extract_strided_slice %1 {offsets = [0, 3, 0], sizes = [3, 1, 64], strides = [1, 1, 1]} : vector<3x8x64xf32> to vector<3x1x64xf32>
    %29 = math.exp %28 : vector<3x1x64xf32>
    %30 = vector.extract_strided_slice %27 {offsets = [0, 0, 0], sizes = [1, 1, 64], strides = [1, 1, 1]} : vector<3x1x64xf32> to vector<1x1x64xf32>
    %cst_9 = arith.constant 1.000000e+01 : f32
    %31 = vector.broadcast %cst_9 : f32 to vector<1x1x64xf32>
    %32 = arith.mulf %30, %31 : vector<1x1x64xf32>
    %33 = vector.extract_strided_slice %27 {offsets = [1, 0, 0], sizes = [1, 1, 64], strides = [1, 1, 1]} : vector<3x1x64xf32> to vector<1x1x64xf32>
    %cst_10 = arith.constant 1.600000e+01 : f32
    %34 = vector.broadcast %cst_10 : f32 to vector<1x1x64xf32>
    %35 = arith.mulf %33, %34 : vector<1x1x64xf32>
    %36 = vector.extract_strided_slice %27 {offsets = [2, 0, 0], sizes = [1, 1, 64], strides = [1, 1, 1]} : vector<3x1x64xf32> to vector<1x1x64xf32>
    %cst_11 = arith.constant 3.300000e+01 : f32
    %37 = vector.broadcast %cst_11 : f32 to vector<1x1x64xf32>
    %38 = arith.mulf %36, %37 : vector<1x1x64xf32>
    %39 = tpu.concatenate %32, %35, %38 in 0 : vector<1x1x64xf32>, vector<1x1x64xf32>, vector<1x1x64xf32> -> vector<3x1x64xf32>
    %40 = vector.extract_strided_slice %29 {offsets = [0, 0, 0], sizes = [1, 1, 64], strides = [1, 1, 1]} : vector<3x1x64xf32> to vector<1x1x64xf32>
    %cst_12 = arith.constant 1.300000e+01 : f32
    %41 = vector.broadcast %cst_12 : f32 to vector<1x1x64xf32>
    %42 = arith.mulf %40, %41 : vector<1x1x64xf32>
    %43 = vector.extract_strided_slice %29 {offsets = [1, 0, 0], sizes = [1, 1, 64], strides = [1, 1, 1]} : vector<3x1x64xf32> to vector<1x1x64xf32>
    %cst_13 = arith.constant 3.000000e+01 : f32
    %44 = vector.broadcast %cst_13 : f32 to vector<1x1x64xf32>
    %45 = arith.mulf %43, %44 : vector<1x1x64xf32>
    %46 = vector.extract_strided_slice %29 {offsets = [2, 0, 0], sizes = [1, 1, 64], strides = [1, 1, 1]} : vector<3x1x64xf32> to vector<1x1x64xf32>
    %cst_14 = arith.constant 2.300000e+01 : f32
    %47 = vector.broadcast %cst_14 : f32 to vector<1x1x64xf32>
    %48 = arith.mulf %46, %47 : vector<1x1x64xf32>
    %49 = tpu.concatenate %42, %45, %48 in 0 : vector<1x1x64xf32>, vector<1x1x64xf32>, vector<1x1x64xf32> -> vector<3x1x64xf32>
    %50 = vector.extract_strided_slice %1 {offsets = [0, 4, 0], sizes = [3, 1, 64], strides = [1, 1, 1]} : vector<3x8x64xf32> to vector<3x1x64xf32>
    %51 = arith.negf %50 : vector<3x1x64xf32>
    %52 = math.exp %51 : vector<3x1x64xf32>
    %cst_15 = arith.constant 1.000000e+00 : f32
    %53 = vector.broadcast %cst_15 : f32 to vector<3x1x64xf32>
    %54 = arith.addf %53, %52 : vector<3x1x64xf32>
    %55 = arith.divf %53, %54 : vector<3x1x64xf32>
    %56 = vector.extract_strided_slice %1 {offsets = [0, 5, 0], sizes = [3, 1, 64], strides = [1, 1, 1]} : vector<3x8x64xf32> to vector<3x1x64xf32>
    %cst_16 = arith.constant 0.000000e+00 : f32
    %57 = vector.broadcast %cst_16 : f32 to vector<3x1x64xf32>
    %58 = vector.extract_strided_slice %1 {offsets = [0, 6, 0], sizes = [3, 1, 64], strides = [1, 1, 1]} : vector<3x8x64xf32> to vector<3x1x64xf32>
    %59 = arith.cmpf ogt, %58, %56 : vector<3x1x64xf32>
    %60 = arith.select %59, %58, %56 : vector<3x1x64xi1>, vector<3x1x64xf32>
    %cst_17 = arith.constant 1.000000e+00 : f32
    %61 = vector.broadcast %cst_17 : f32 to vector<3x1x64xf32>
    %62 = arith.select %59, %61, %57 : vector<3x1x64xi1>, vector<3x1x64xf32>
    %63 = vector.extract_strided_slice %1 {offsets = [0, 7, 0], sizes = [3, 1, 64], strides = [1, 1, 1]} : vector<3x8x64xf32> to vector<3x1x64xf32>
    %64 = arith.cmpf ogt, %63, %60 : vector<3x1x64xf32>
    %cst_18 = arith.constant 2.000000e+00 : f32
    %65 = vector.broadcast %cst_18 : f32 to vector<3x1x64xf32>
    %66 = arith.select %64, %65, %62 : vector<3x1x64xi1>, vector<3x1x64xf32>
    %cst_19 = arith.constant 0.000000e+00 : f32
    %67 = vector.broadcast %cst_19 : f32 to vector<3x2x64xf32>
    %68 = tpu.concatenate %15, %25, %39, %49, %55, %66, %67 in 1 : vector<3x1x64xf32>, vector<3x1x64xf32>, vector<3x1x64xf32>, vector<3x1x64xf32>, vector<3x1x64xf32>, vector<3x1x64xf32>, vector<3x2x64xf32> -> vector<3x8x64xf32>
    %c0_20 = arith.constant 0 : index
    %c0_21 = arith.constant 0 : index
    %c0_22 = arith.constant 0 : index
    %c0_23 = arith.constant 0 : index
    %69 = vector.load %arg3[%c0_20, %c0_21, %c0_22, %c0_23] : memref<1x3x8x64xf32, #tpu.memory_space<vmem>>, vector<1x3x8x64xf32>
    %70 = vector.shape_cast %69 : vector<1x3x8x64xf32> to vector<3x8x64xf32>
    %71 = vector.shape_cast %68 : vector<3x8x64xf32> to vector<1x3x8x64xf32>
    tpu.vector_store %arg3[%c0_20, %c0_21, %c0_22, %c0_23], %71 {strides = array<i32>} : memref<1x3x8x64xf32, #tpu.memory_space<vmem>>, vector<1x3x8x64xf32>,
    return
  }
  func.func @transform_0(%arg0: i32) -> (i32, i32) {
    %c0_i32 = arith.constant 0 : i32
    %c0_i32_0 = arith.constant 0 : i32
    %c0_i32_1 = arith.constant 0 : i32
    return %c0_i32, %c0_i32_0 : i32, i32
  }
  func.func @transform_1(%arg0: i32) -> (i32, i32, i32, i32) {
    %c0_i32 = arith.constant 0 : i32
    %c0_i32_0 = arith.constant 0 : i32
    %c0_i32_1 = arith.constant 0 : i32
    %c0_i32_2 = arith.constant 0 : i32
    return %arg0, %c0_i32, %c0_i32_0, %c0_i32_1 : i32, i32, i32, i32
  }
  func.func @transform_2(%arg0: i32) -> (i32, i32, i32, i32) {
    %c0_i32 = arith.constant 0 : i32
    %c0_i32_0 = arith.constant 0 : i32
    %c0_i32_1 = arith.constant 0 : i32
    %c0_i32_2 = arith.constant 0 : i32
    return %arg0, %c0_i32, %c0_i32_0, %c0_i32_1 : i32, i32, i32, i32
  }
}

</mosaic_0001>

<bundles_post_ra>
// kernel: tpu_custom_call.1
= control target key start
LH: loop header
LB: loop body
LE: loop exit
PB: predicated region body
PF: predicated region fallthrough
CT: control target
= control target key end

     0   :  { %7 = vsyncpa [#allocation3], 0  ;;  %s950_s0 = inlined_call_operand.hbm [shape: f32[2,64], index: 0, kind: input, shape index: {}]   ;;  %s951_s1 = inlined_call_operand.hbm [shape: f32[2,3,8,64], index: 1, kind: input, shape index: {}]   ;;  %s952_s2 = inlined_call_operand.hbm [shape: f32[2,3,8,64], index: 2, kind: output, shape index: {}]  }
   0x1   :  { %8 = vsyncpa [#allocation6], 0 }
   0x2   :  { %10 = vsyncpa [#allocation6 + $0x1], 0 }
   0x3   :  { %11 = vsyncpa [#allocation4], 0 }
   0x4   :  { %13 = vsyncpa [#allocation4 + $0x1], 0  ;;  %s698_s9 = smov 0   ;;  %s700_s10 = smov 0  }
   0x5   :  { %s702_s11 = smov 0   ;;  %s704_s12 = smov 0  }
   0x6 LB: > { %s719_s13 = sadd.s32 4294967295, %s675_s12   ;;  %s448_s14 = sadd.s32 4294967294, %s675_s12   ;;  %s675_s12 = sphi %s704_s12, %s977_s12   ;;  %s671_s11 = sphi %s702_s11, %s976_s11   ;;  %s667_s10 = sphi %s700_s10, %s975_s10   ;;  %s663_s9 = sphi %s698_s9, %s974_s9  }
   0x7   : > { %s723_s15 = sadd.s32 1, %s675_s12   ;;  %s47_s16 = sadd.s32 1, %s671_s11 }
   0x8   : > { %s44_s17 = ssub.s32 %s675_s12, %s723_s15  ;;  %p54_p0 = scmp.ne.s32.totalorder %s671_s11, %s667_s10 }
   0x9   : > { %p45_p1 = scmp.eq.s32.totalorder %s44_s17, 0  ;;  %p55_p2 = scmp.eq.s32.totalorder %s675_s12, 0 }
   0xa   : > { %p60_p3 = scmp.ne.s32.totalorder %s667_s10, %s663_s9  ;;  %p61_p4 = scmp.eq.s32.totalorder %s719_s13, 0 }
   0xb   : > { %s735_s18 = scalar_select %p45_p1, %s671_s11, %s47_s16  }
   0xc   : > { %p737_p5 = por %p55_p2, %p54_p0  ;;  %p743_p6 = por %p61_p4, %p60_p3 }
   0xd   : > { %p84_p7 = scmp.eq.s32.totalorder %s719_s13, 1  ;;  %p90_p8 = scmp.eq.s32.totalorder %s448_s14, 1 }
   0xe   : > { %p449_p9 = scmp.ge.s32.totalorder %s675_s12, 1  ;;  %p97_p10 = scmp.lt.s32.totalorder %s675_s12, 3 }
   0xf   : > { %p750_p11 = por %p84_p7, %p54_p0  ;;  %p754_p12 = por %p90_p8, %p60_p3 }
  0x10   : > { %p758_p13 = pnand %p449_p9, %p97_p10  ;;  %s109_s26 = sshll.u32 %s950_s0, 4  ;;  %s110_s26 = int_to_ptr.hbm [resolvable:$true] %s109_s26 }
  0x11   : > { %s677_s27 = smov [#allocation2]   ;;  %p486_p3 = scmp.lt.s32.totalorder %s675_s12, 2 }
  0x12   : > { %p473_p1 = pneg %p758_p13  ;;  %s111_s28 = sshll.u32 %s677_s27, 4  ;;  %s112_s28 = int_to_ptr.vmem [resolvable:$true] %s111_s28 }
  0x13   : > { %s122_s29 = sand.u32 1, %s671_s11   ;;  %p774_p7 = pnand %p486_p3, %p737_p5 }
  0x14   : > { %p474_p2 = pnand %p473_p1, %p61_p4  ;;  %s461_s3 = smul.u32 24, %s122_s29 }
  0x15   : > { %s462_s4 = smul.u32 24, %s675_s12  ;;  %s123_s17 = scalar_lea.sflag [#allocation6], %s122_s29 }
  0x16   : > { %476 = dma.hbm_to_vmem [thread:$0]  (!%p474_p2), %s110_s26, 32, %s112_s28, [#allocation3]  }
  0x17   : > { %s131_s7 = scalar_lea.hbm %s951_s1, %s462_s4  ;;  %s126_s8 = scalar_lea.vmem [#allocation5], %s461_s3 }
  0x18   : > { %s134_s14 = sshll.u32 %s126_s8, 4  ;;  %s132_s16 = sshll.u32 %s131_s7, 4  ;;  %s135_s14 = int_to_ptr.vmem [resolvable:$true] %s134_s14  ;;  %s133_s16 = int_to_ptr.hbm [resolvable:$true] %s132_s16 }
  0x19   : > { %s575_s24 = sshra.s32 %s133_s16, 4  ;;  %p579_p8 = pneg %p774_p7  ;;  %s576_s24 = int_to_ptr.hbm [resolvable:$true] %s575_s24 }
  0x1a   : > { %s577_s19 = scalar_lea.hbm %s576_s24, 24  ;;  %s582_s27 = scalar_lea.hbm %s951_s1, 48 }
  0x1b   : > { %p578_p5 = scmp.ne.s32.totalorder %s576_s24, %s577_s19  ;;  %p583_p1 = scmp.lt.s32.totalorder %s576_s24, %s951_s1 }
  0x1c   : > { %p584_p2 = scmp.lt.s32.totalorder %s582_s27, %s577_s19 }
  0x1d   : > { %p580_p9 = pnand %p579_p8, %p578_p5 }
  0x1e   : > { %p585_p3 = por %p584_p2, %p583_p1 }
  0x1f   : > { %p581_p10 = pneg %p580_p9 }
  0x21   : > { %p586_p0 = pnand %p585_p3, %p581_p10 }
  0x23   : > { %589 = shalt.err (!%p586_p0)
}
  0x24   : > { %s678_s29 = smov 128   ;;  %s679_s3 = smov 8  }
  0x25   : > { %480 = dma.hbm_to_vmem [thread:$0]  (!%p774_p7), %s133_s16, 384, %s135_s14, %s123_s17, %s678_s29, %s678_s29, %s679_s3  }
  0x26   : > { %146 = sbr.rel (%p758_p13) target bundleno = 97 (0x61), region = 28 }
  0x2b   : > { %650 = dma.done.wait (%p61_p4), [#allocation3], 32  }
  0x2c   : > { %652 = vsyncadd (%p61_p4), [#allocation3], 4294967264  ;;  %s799_s5 = sand.u32 1, %s667_s10  }
  0x2d   : > { %s463_s6 = smul.u32 24, %s799_s5  ;;  %s154_s7 = scalar_lea.sflag [#allocation6], %s799_s5 }
  0x2f   : > { %s157_s30 = scalar_lea.vmem [#allocation5], %s463_s6 }
  0x30   : > { %654 = dma.done.wait (%p743_p6), %s154_s7, 384  }
  0x31   : > { %656 = vsyncadd (%p743_p6), %s154_s7, 4294966912  ;;  %v179_v0 = vld [vmem:[%s157_s30] sm:$0xff]  ;;  %v180_v3 = vld [vmem:[%s157_s30 + $0x8] sm:$0xff]  ;;  %v680_v12 = vmov 0.0   ;;  %vm319_vm6 = vcmask 1040384   ;;  %vm323_vm7 = vcmask 1041408  }
  0x32   : > { %v455_v1 = vmul.f32 -1.442695, %v179_v0  ;;  %v271_v2 = vrot.slane %v179_v0, 7  ;;  %v456_v4 = vmul.f32 -1.442695, %v180_v3  ;;  %v809_v5 = vld [vmem:[%s157_s30 + $0x10] sm:$0xff] }
  0x33   : > { %v457_v6 = vmul.f32 -1.442695, %v809_v5  ;;  %v256_v9 = vmul.f32 1.442695, %v179_v0  ;;  %v272_v10 = vrot.slane %v180_v3, 7  ;;  %v273_v24 = vrot.slane %v809_v5, 7 }
  0x34   : > { %527 = vpow2.f32 %v455_v1  ;;  %vm277_vm0 = vcmp.gt.f32.partialorder %v179_v0, %v271_v2  ;;  %v183_v19 = vld [vmem:[#allocation2 + $0x1] sm:$0x1]  ;;  %v258_v20 = vmul.f32 1.442695, %v180_v3  ;;  %v260_v23 = vmul.f32 1.442695, %v809_v5 }
  0x35   : > { %529 = vpow2.f32 %v456_v4  ;;  %v280_v7 = vsel %vm277_vm0, %v179_v0, %v271_v2  ;;  %v283_v13 = vsel %vm277_vm0, 1.0, %v680_v12  ;;  %vm278_vm1 = vcmp.gt.f32.partialorder %v180_v3, %v272_v10  ;;  %v182_v57 = vld [vmem:[#allocation2] sm:$0x1]  ;;  %s464_s20 = smul.u32 24, %s719_s13  ;;  %s178_s14 = scalar_lea.vmem [#allocation7], %s463_s6 }
  0x36   : > { %531 = vpow2.f32 %v457_v6  ;;  %v289_v14 = vrot.slane %v280_v7, 7  ;;  %v301_v16 = vrot.slane %v283_v13, 7  ;;  %v281_v21 = vsel %vm278_vm1, %v180_v3, %v272_v10  ;;  %s360_s16 = sshll.u32 %s178_s14, 4  ;;  %s348_s24 = scalar_lea.sflag [#allocation4], %s799_s5  ;;  %s361_s16 = int_to_ptr.vmem [resolvable:$true] %s360_s16 }
  0x37   : > { %v284_v26 = vsel %vm278_vm1, 1.0, %v680_v12  ;;  %v821_v28 = vrot.slane %v183_v19, 7  ;;  %v290_v32 = vrot.slane %v281_v21, 7  ;;  %vm826_vm3 = vcmp.gt.f32.partialorder %v809_v5, %v273_v24  ;;  %s359_s8 = scalar_lea.hbm %s952_s2, %s464_s20  ;;  %s625_s28 = scalar_lea.hbm %s952_s2, 48 }
  0x38   : > { %vm295_vm2 = vcmp.gt.f32.partialorder %v179_v0, %v289_v14  ;;  %v302_v34 = vrot.slane %v284_v26, 7  ;;  %v282_v46 = vsel %vm826_vm3, %v809_v5, %v273_v24  ;;  %vm327_vm10 = vcmask 1042432   ;;  %s362_s17 = sshll.u32 %s359_s8, 4  ;;  %s363_s17 = int_to_ptr.hbm [resolvable:$true] %s362_s17 }
  0x39   : > { %v819_v25 = vsel %vm295_vm2, 2.0, %v301_v16  ;;  %vm836_vm8 = vcmp.gt.f32.partialorder %v180_v3, %v290_v32  ;;  %vm331_vm14 = vcmask 1043456   ;;  %v285_v55 = vsel %vm826_vm3, 1.0, %v680_v12  ;;  %s619_s19 = sshra.s32 %s363_s17, 4  ;;  %s620_s19 = int_to_ptr.hbm [resolvable:$true] %s619_s19 }
  0x3a   : > { %v528_v8 = vpop.eup %527  ;;  %v313_v33 = vrot.slane %v819_v25, 2  ;;  %vm335_vm15 = vcmask 1044480   ;;  %vm339_vm0 = vcmask 1045504   ;;  %v308_v3 = vsel %vm836_vm8, 2.0, %v302_v34  ;;  %s621_s25 = scalar_lea.hbm %s620_s19, 24  ;;  %p626_p0 = scmp.lt.s32.totalorder %s620_s19, %s952_s2 }
  0x3b   : > { %v193_v11 = vadd.f32 1.0, %v528_v8  ;;  %v530_v15 = vpop.eup %529  ;;  %v291_v8 = vrot.slane %v282_v46, 7  ;;  %v303_v21 = vrot.slane %v285_v55, 7  ;;  %p622_p4 = scmp.ne.s32.totalorder %s620_s19, %s621_s25  ;;  %p627_p7 = scmp.lt.s32.totalorder %s625_s28, %s621_s25 }
  0x3c   : > { %v812_v17 = vadd.f32 1.0, %v530_v15  ;;  %v532_v18 = vpop.eup %531 }
  0x3d   : > { %533 = vrcp.f32 %v193_v11  ;;  %v815_v22 = vadd.f32 1.0, %v532_v18  ;;  %v207_v31 = vand.u32 2147483648, %v193_v11  ;;  %vm201_vm4 = vweird.f32 %v193_v11  ;;  %p623_p6 = pnand %p622_p4, %p750_p11  ;;  %p628_p5 = por %p627_p7, %p626_p0 }
  0x3e   : > { %535 = vpow2.f32 %v256_v9  ;;  %v205_v38 = vand.u32 2147483647, %v193_v11  ;;  %v222_v42 = vand.u32 2147483648, %v812_v17  ;;  %vm216_vm11 = vweird.f32 %v812_v17 }
  0x3f   : > { %537 = vrcp.f32 %v812_v17  ;;  %v208_v44 = vor.u32 1.1754944e-38, %v207_v31  ;;  %v220_v50 = vand.u32 2147483647, %v812_v17  ;;  %v235_v60 = vand.u32 2147483647, %v815_v22  ;;  %p624_p13 = pneg %p623_p6 }
  0x40   : > { %539 = vrcp.f32 %v815_v22  ;;  %vm849_vm13 = vcmp.eq.f32.partialorder %v205_v38, 8.507059e+37  ;;  %v223_v59 = vor.u32 1.1754944e-38, %v222_v42  ;;  %v237_v61 = vand.u32 2147483648, %v815_v22 }
  0x41   : > { %541 = vpow2.f32 %v258_v20  ;;  %vm231_vm2 = vweird.f32 %v815_v22  ;;  %vm297_vm8 = vcmp.gt.f32.partialorder %v809_v5, %v291_v8  ;;  %p629_p8 = pnand %p628_p5, %p624_p13 }
  0x42   : > { %543 = vpow2.f32 %v260_v23  ;;  %v238_v13 = vor.u32 1.1754944e-38, %v237_v61  ;;  %v314_v23 = vrot.slane %v308_v3, 2  ;;  %v309_v38 = vsel %vm297_vm8, 2.0, %v303_v21 }
  0x43   : > { %v534_v27 = vpop.eup %533 }
  0x44   : > { %v536_v29 = vpop.eup %535  ;;  %v197_v30 = vmul.f32 %v534_v27, %v193_v11  ;;  %vm202_vm5 = vweird.f32 %v534_v27 }
  0x45   : > { %v538_v36 = vpop.eup %537  ;;  %v830_v39 = vmul.f32 10.0, %v536_v29  ;;  %v832_v40 = vmul.f32 13.0, %v536_v29  ;;  %vm843_vm9 = vmor %vm201_vm4, %vm202_vm5  ;;  %vm343_vm4 = vcmask 523264   ;;  %vm221_vm5 = vcmp.eq.f32.partialorder %v220_v50, 8.507059e+37 }
  0x46   : > { %v198_v37 = vsub.f32 1.0, %v197_v30  ;;  %v212_v41 = vmul.f32 %v538_v36, %v812_v17  ;;  %v540_v47 = vpop.eup %539  ;;  %vm217_vm12 = vweird.f32 %v538_v36 }
  0x47   : > { %v542_v51 = vpop.eup %541  ;;  %v227_v54 = vmul.f32 %v540_v47, %v815_v22  ;;  %vm863_vm1 = vmor %vm216_vm11, %vm217_vm12  ;;  %vm232_vm3 = vweird.f32 %v540_v47  ;;  %vm879_vm11 = vcmp.eq.f32.partialorder %v235_v60, 8.507059e+37 }
  0x48   : > { %v199_v43 = vmul.f32 %v534_v27, %v198_v37  ;;  %v213_v49 = vsub.f32 1.0, %v212_v41  ;;  %v544_v56 = vpop.eup %543  ;;  %v263_v10 = vmul.f32 16.0, %v542_v51  ;;  %v266_v20 = vmul.f32 30.0, %v542_v51 }
  0x49   : > { %v228_v0 = vsub.f32 1.0, %v227_v54  ;;  %v264_v35 = vmul.f32 33.0, %v544_v56  ;;  %v267_v37 = vmul.f32 23.0, %v544_v56 }
  0x4a   : > { %v200_v52 = vadd.f32 %v534_v27, %v199_v43  ;;  %v214_v58 = vmul.f32 %v538_v36, %v213_v49 }
  0x4b   : > { %v229_v7 = vmul.f32 %v540_v47, %v228_v0 }
  0x4c   : > { %v204_v62 = vsel %vm843_vm9, %v534_v27, %v200_v52  ;;  %v215_v2 = vadd.f32 %v538_v36, %v214_v58  ;;  %vm875_vm9 = vmor %vm231_vm2, %vm232_vm3 }
  0x4d   : > { %v209_v1 = vsel %vm849_vm13, %v208_v44, %v204_v62  ;;  %v230_v17 = vadd.f32 %v540_v47, %v229_v7 }
  0x4e   : > { %v241_v4 = vadd.f32 %v209_v1, %v182_v57  ;;  %v250_v6 = vadd.f32 %v821_v28, %v209_v1  ;;  %v219_v9 = vsel %vm863_vm1, %v538_v36, %v215_v2 }
  0x4f   : > { %v224_v16 = vsel %vm221_vm5, %v223_v59, %v219_v9  ;;  %v234_v24 = vsel %vm875_vm9, %v540_v47, %v230_v17 }
  0x50   : > { %v244_v14 = vmul.f32 8.0, %v241_v4  ;;  %v253_v15 = vmul.f32 8.0, %v250_v6  ;;  %v242_v18 = vadd.f32 %v224_v16, %v182_v57  ;;  %v251_v19 = vadd.f32 %v821_v28, %v224_v16 }
  0x51   : > { %v239_v30 = vsel %vm879_vm11, %v238_v13, %v234_v24 }
  0x52   : > { %v320_v22 = vsel %vm319_vm6, %v244_v14, %v253_v15  ;;  %v245_v27 = vmul.f32 8.0, %v242_v18  ;;  %v254_v29 = vmul.f32 8.0, %v251_v19  ;;  %v243_v32 = vadd.f32 %v239_v30, %v182_v57 }
  0x53   : > { %v324_v26 = vsel %vm323_vm7, %v320_v22, %v830_v39  ;;  %v252_v34 = vadd.f32 %v821_v28, %v239_v30 }
  0x54   : > { %v328_v31 = vsel %vm327_vm10, %v324_v26, %v832_v40  ;;  %v321_v5 = vsel %vm319_vm6, %v245_v27, %v254_v29  ;;  %v246_v42 = vmul.f32 8.0, %v243_v32 }
  0x55   : > { %v332_v36 = vsel %vm331_vm14, %v328_v31, %v209_v1  ;;  %v325_v41 = vsel %vm323_vm7, %v321_v5, %v263_v10  ;;  %v255_v43 = vmul.f32 8.0, %v252_v34 }
  0x56   : > { %v336_v39 = vsel %vm335_vm15, %v332_v36, %v313_v33  ;;  %v329_v40 = vsel %vm327_vm10, %v325_v41, %v266_v20  ;;  %v315_v33 = vrot.slane %v309_v38, 2 }
  0x57   : > { %v340_v28 = vsel %vm339_vm0, %v336_v39, 0.0  ;;  %v333_v25 = vsel %vm331_vm14, %v329_v40, %v224_v16  ;;  %v322_v44 = vsel %vm319_vm6, %v246_v42, %v255_v43 }
  0x58   : > { %344 = vst.msk [vmem:[%s178_s14] sm:$0xff] %vm343_vm4, %v340_v28  ;;  %v337_v45 = vsel %vm335_vm15, %v333_v25, %v314_v23  ;;  %v326_v46 = vsel %vm323_vm7, %v322_v44, %v264_v35 }
  0x59   : > { %v341_v47 = vsel %vm339_vm0, %v337_v45, 0.0  ;;  %v330_v48 = vsel %vm327_vm10, %v326_v46, %v267_v37 }
  0x5a   : > { %345 = vst.msk [vmem:[%s178_s14 + $0x8] sm:$0xff] %vm343_vm4, %v341_v47  ;;  %v334_v49 = vsel %vm331_vm14, %v330_v48, %v239_v30 }
  0x5b   : > { %v338_v50 = vsel %vm335_vm15, %v334_v49, %v315_v33 }
  0x5c   : > { %v342_v51 = vsel %vm339_vm0, %v338_v50, 0.0 }
  0x5d   : > { %346 = vst.msk [vmem:[%s178_s14 + $0x10] sm:$0xff] %vm343_vm4, %v342_v51 }
  0x5e   : > { %632 = shalt.err (!%p629_p8)
}
  0x5f   : > { %s681_s3 = smov 128   ;;  %s682_s5 = smov 8  }
  0x60   : > { %471 = dma.vmem_to_hbm [thread:$0]  (%p750_p11), %s361_s16, 384, %s363_s17, %s348_s24, %s681_s3, %s681_s3, %s682_s5  }
  0x61 PF: > { %s377_s6 = sand.u32 1, %s663_s9   ;;  %p973_p9 = scmp.ge.s32.totalorder %s675_s12, 2 }
  0x62   : > { %s378_s7 = scalar_lea.sflag [#allocation4], %s377_s6 }
  0x63   : > { %p482_p10 = pnand %p973_p9, %p754_p12 }
  0x65   : > { %p483_p1 = pneg %p482_p10 }
  0x67   : > { %658 = dma.done.wait (%p483_p1), %s378_s7, 384  }
  0x68   : > { %660 = vsyncadd (%p483_p1), %s378_s7, 4294966912  ;;  %p16_p2 = scmp.ge.s32.totalorder %s723_s15, 4   ;;  %s974_s9 = smov %s667_s10 }
  0x69   : > { %s975_s10 = smov %s671_s11  ;;  %s976_s11 = smov %s735_s18 }
  0x6a   : > { %s977_s12 = smov %s723_s15  ;;  %18 = sbr.rel (!%p16_p2) target bundleno = 6 (0x6), region = 78 }
  0x6f   :  { %384 = vsyncpa [#allocation3], 1 }
  0x70   :  { %386 = vsyncpa [#allocation3 + $0x1], 1 }
  0x71   :  { %387 = vsyncpa [#allocation6], 1 }
  0x72   :  { %389 = vsyncpa [#allocation6 + $0x1], 1 }
  0x73   :  { %390 = vsyncpa [#allocation4], 1 }
  0x74   :  { %392 = vsyncpa [#allocation4 + $0x1], 1 }

</bundles_post_ra>
